<compile_context>
chip_gen: v7x
topology: tpu7x:2x2x1
jax: 0.10.0
libtpu: 0.0.40
codegen_flags: <defaults>
</compile_context>

<pallas_src>
import jax
import jax.numpy as jnp
import numpy as np
from jax.experimental import pallas as pl
from jax.experimental.pallas import tpu as pltpu

HIDDEN = 100        # logical hidden width (matches the PyTorch module)
HIDDEN_PAD = 128    # lane-padded hidden width used inside the kernel
LANE = 128
SUBLANE = 8

# 32 MiB scoped VMEM: <= physical on every generation (v5e/v6e: 128 MiB,
# v7x: 64 MiB per TC) and >= every chip's scoped default we rely on.
VMEM_LIMIT_BYTES = 32 * 1024 * 1024
# Budget for pipelined tiles + temporaries (leave headroom under the limit).
VMEM_TILE_BUDGET = 20 * 1024 * 1024


def feedforward_kernel(x_ref, w1_ref, b1_ref, w2_ref, b2_ref, o_ref):
    # First linear: [tb, D_in] @ [D_in, 128] -> [tb, 128]   (MXU, f32 accum)
    h = jnp.dot(x_ref[...], w1_ref[...], preferred_element_type=jnp.float32)
    h = h + b1_ref[...]                       # broadcast (1, 128) bias
    # Dropout(p=0.3) in eval mode == identity.
    # Exact sigmoid: kernel is memory-bound, so the exact divide costs nothing
    # and handles exp(-h) overflow (-> +inf) with the correct 0 limit.
    h = 1.0 / (1.0 + jnp.exp(-h))
    # Second linear: [tb, 128] @ [128, d_out_k] -> [tb, d_out_k]
    y = jnp.dot(h, w2_ref[...], preferred_element_type=jnp.float32)
    y = y + b2_ref[...]                       # broadcast (1, d_out_k) bias
    o_ref[...] = y.astype(o_ref.dtype)


def _kernel_out_width(d_out):
    """Width of the output block inside the kernel.

    Only take the lane-dense (unmasked vst) path when padding overhead is
    small; otherwise padded writeback + a wrapper slice costs far more HBM
    traffic than masked stores of the narrow output.
    """
    pad_to = pl.cdiv(d_out, LANE) * LANE
    return pad_to if (pad_to - d_out) * 8 <= d_out else d_out


def prepare_params(w1, b1, w2, b2):
    """One-time parameter prep: zero-pad hidden dim 100->128 (exact) and,
    when beneficial, the output dim to a multiple of 128."""
    d_in, h = w1.shape
    assert h == HIDDEN and w2.shape[0] == HIDDEN
    d_out = w2.shape[1]
    d_out_k = _kernel_out_width(d_out)
    hp = HIDDEN_PAD - HIDDEN
    op = d_out_k - d_out
    w1p = jnp.pad(w1, ((0, 0), (0, hp)))                    # [D_in, 128]
    b1p = jnp.pad(b1.reshape(1, HIDDEN), ((0, 0), (0, hp)))  # [1, 128]
    w2p = jnp.pad(w2, ((0, hp), (0, op)))                    # [128, d_out_k]
    b2p = jnp.pad(b2.reshape(1, d_out), ((0, 0), (0, op)))   # [1, d_out_k]
    return (w1p, b1p, w2p, b2p), d_out


def _choose_tb(B, d_in, d_out_k, block_b):
    """Batch tile from an explicit VMEM budget (safe across v5e/v6e/v7x)."""
    # Per-row bytes: double-buffered x tile + double-buffered out tile
    # + in-kernel h and y temporaries (all f32).
    bytes_per_row = 4 * (2 * d_in + 2 * d_out_k + HIDDEN_PAD + d_out_k)
    # Resident (still double-buffered by the pipeline) weights + biases.
    weight_bytes = 4 * 2 * (d_in * HIDDEN_PAD + HIDDEN_PAD
                            + HIDDEN_PAD * d_out_k + d_out_k)
    budget = max(VMEM_TILE_BUDGET - weight_bytes, bytes_per_row * SUBLANE)
    tb = min(block_b, budget // bytes_per_row, B)
    # v7x megacore: for a big batch keep >=2 grid steps so the "parallel" axis
    # actually shards across both TensorCores (no-op on v5e/v6e).
    if B >= 2 * 256:
        tb = min(tb, pl.cdiv(B, 2))
    # Alignment: multiple of 256 (MXU-friendly) when large, else multiple of 8,
    # else fall back to the full (tiny) batch so block dims equal array dims.
    if tb >= 256:
        tb = (tb // 256) * 256
    elif tb >= SUBLANE:
        tb = (tb // SUBLANE) * SUBLANE
    else:
        tb = B
    return max(min(tb, B), 1)


def feedforward_prepped(x, prepped, d_out, *, block_b=2048):
    """x: [B, D_in] f32; prepped = padded (w1, b1, w2, b2) from prepare_params."""
    w1p, b1p, w2p, b2p = prepped
    B, d_in = x.shape
    d_out_k = w2p.shape[1]
    tb = _choose_tb(B, d_in, d_out_k, block_b)
    grid = (pl.cdiv(B, tb),)

    cost = pl.CostEstimate(
        flops=2 * B * HIDDEN_PAD * (d_in + d_out_k),
        transcendentals=B * HIDDEN_PAD,
        bytes_accessed=4 * (B * d_in                       # x stream
                            + d_in * HIDDEN_PAD + HIDDEN_PAD   # w1, b1
                            + HIDDEN_PAD * d_out_k + d_out_k   # w2, b2
                            + B * d_out_k),                # output stream
    )

    out = pl.pallas_call(
        feedforward_kernel,
        out_shape=jax.ShapeDtypeStruct((B, d_out_k), x.dtype),
        grid=grid,
        in_specs=[
            pl.BlockSpec((tb, d_in), lambda i: (i, 0)),             # x: batch-tiled
            pl.BlockSpec((d_in, HIDDEN_PAD), lambda i: (0, 0)),     # w1: resident
            pl.BlockSpec((1, HIDDEN_PAD), lambda i: (0, 0)),        # b1: resident
            pl.BlockSpec((HIDDEN_PAD, d_out_k), lambda i: (0, 0)),  # w2: resident
            pl.BlockSpec((1, d_out_k), lambda i: (0, 0)),           # b2: resident
        ],
        out_specs=pl.BlockSpec((tb, d_out_k), lambda i: (i, 0)),
        compiler_params=pltpu.CompilerParams(
            dimension_semantics=("parallel",),       # v7x: shard batch across 2 TCs
            vmem_limit_bytes=VMEM_LIMIT_BYTES,
        ),
        cost_estimate=cost,
    )(x, w1p, b1p, w2p, b2p)

    if d_out_k != d_out:          # only on the (rare) lane-dense padded path
        out = out[:, :d_out]
    return out


def feedforward(x, w1, b1, w2, b2, *, block_b=2048):
    """Convenience wrapper: x [B, D_in]; w1 [D_in,100]; b1 [1,100];
    w2 [100,D_out]; b2 [1,D_out]."""
    prepped, d_out = prepare_params(w1, b1, w2, b2)
    return feedforward_prepped(x, prepped, d_out, block_b=block_b)


def init_params(key, d_in, d_out):
    """Deterministic PyTorch-style Linear init: U(-1/sqrt(fan_in), 1/sqrt(fan_in))."""
    k1, k2, k3, k4 = jax.random.split(key, 4)
    bound1 = 1.0 / np.sqrt(d_in)
    bound2 = 1.0 / np.sqrt(HIDDEN)
    w1 = jax.random.uniform(k1, (d_in, HIDDEN), jnp.float32, -bound1, bound1)
    b1 = jax.random.uniform(k2, (1, HIDDEN), jnp.float32, -bound1, bound1)
    w2 = jax.random.uniform(k3, (HIDDEN, d_out), jnp.float32, -bound2, bound2)
    b2 = jax.random.uniform(k4, (1, d_out), jnp.float32, -bound2, bound2)
    return w1, b1, w2, b2


if __name__ == "__main__":
    B, D_in, D_out = 8, 32, 16
    key = jax.random.PRNGKey(0)
    kx, kp = jax.random.split(key)
    x = jax.random.normal(kx, (B, D_in), jnp.float32)
    w1, b1, w2, b2 = init_params(kp, D_in, D_out)

    out = feedforward(x, w1, b1, w2, b2)
    out = jax.block_until_ready(out)

    # Pure-JAX reference (eval-mode dropout = identity).  Sigmoid is exact in
    # the kernel; remaining difference is MXU vs XLA matmul rounding.
    ref = jax.nn.sigmoid(x @ w1 + b1) @ w2 + b2
    np.testing.assert_allclose(np.asarray(out), np.asarray(ref), rtol=2e-3, atol=2e-3)

    print("KERNEL_OK")
</pallas_src>

<mosaic_0001>
module attributes {stable_mosaic.version = 11 : i64} {
  func.func @feedforward_kernel(%arg0: i32, %arg1: memref<8x32xf32, #tpu.memory_space<vmem>>, %arg2: memref<32x128xf32, #tpu.memory_space<vmem>>, %arg3: memref<1x128xf32, #tpu.memory_space<vmem>>, %arg4: memref<128x16xf32, #tpu.memory_space<vmem>>, %arg5: memref<1x16xf32, #tpu.memory_space<vmem>>, %arg6: memref<8x16xf32, #tpu.memory_space<vmem>>) attributes {dimension_semantics = [#tpu.dimension_semantics<parallel>], iteration_bounds = array<i64: 1>, scalar_prefetch = 0 : i64, scratch_operands = 0 : i64, tpu.core_type = #tpu.core_type<tc>, window_params = [{transform_indices = @transform_0, window_bounds = array<i64: 8, 32>}, {pipeline_mode = #tpu.pipeline_mode<synchronous>, transform_indices = @transform_1, window_bounds = array<i64: 32, 128>}, {pipeline_mode = #tpu.pipeline_mode<synchronous>, transform_indices = @transform_2, window_bounds = array<i64: 1, 128>}, {pipeline_mode = #tpu.pipeline_mode<synchronous>, transform_indices = @transform_3, window_bounds = array<i64: 128, 16>}, {pipeline_mode = #tpu.pipeline_mode<synchronous>, transform_indices = @transform_4, window_bounds = array<i64: 1, 16>}, {transform_indices = @transform_5, window_bounds = array<i64: 8, 16>}]} {
    %c0 = arith.constant 0 : index
    %c0_0 = arith.constant 0 : index
    %0 = vector.load %arg1[%c0, %c0_0] : memref<8x32xf32, #tpu.memory_space<vmem>>, vector<8x32xf32>
    %c0_1 = arith.constant 0 : index
    %c0_2 = arith.constant 0 : index
    %1 = vector.load %arg2[%c0_1, %c0_2] : memref<32x128xf32, #tpu.memory_space<vmem>>, vector<32x128xf32>
    %cst = arith.constant dense<0.000000e+00> : vector<8x128xf32>
    %2 = tpu.matmul %0, %1, %cst {dimension_numbers = #tpu.dot_dimension_numbers<[1], [0], [0], [1], [0, 0, 1, 1], [], []>} : vector<8x32xf32>, vector<32x128xf32>, vector<8x128xf32> -> vector<8x128xf32>
    %c0_3 = arith.constant 0 : index
    %c0_4 = arith.constant 0 : index
    %3 = vector.load %arg3[%c0_3, %c0_4] : memref<1x128xf32, #tpu.memory_space<vmem>>, vector<1x128xf32>
    %4 = vector.broadcast %3 : vector<1x128xf32> to vector<8x128xf32>
    %5 = arith.addf %2, %4 : vector<8x128xf32>
    %cst_5 = arith.constant 0.000000e+00 : f32
    %6 = vector.broadcast %cst_5 : f32 to vector<8x128xf32>
    %7 = arith.subf %6, %5 : vector<8x128xf32>
    %8 = math.exp %7 : vector<8x128xf32>
    %cst_6 = arith.constant 1.000000e+00 : f32
    %9 = vector.broadcast %cst_6 : f32 to vector<8x128xf32>
    %10 = arith.addf %9, %8 : vector<8x128xf32>
    %cst_7 = arith.constant 1.000000e+00 : f32
    %11 = vector.broadcast %cst_7 : f32 to vector<8x128xf32>
    %12 = arith.divf %11, %10 : vector<8x128xf32>
    %c0_8 = arith.constant 0 : index
    %c0_9 = arith.constant 0 : index
    %13 = vector.load %arg4[%c0_8, %c0_9] : memref<128x16xf32, #tpu.memory_space<vmem>>, vector<128x16xf32>
    %cst_10 = arith.constant dense<0.000000e+00> : vector<8x16xf32>
    %14 = tpu.matmul %12, %13, %cst_10 {dimension_numbers = #tpu.dot_dimension_numbers<[1], [0], [0], [1], [0, 0, 1, 1], [], []>} : vector<8x128xf32>, vector<128x16xf32>, vector<8x16xf32> -> vector<8x16xf32>
    %c0_11 = arith.constant 0 : index
    %c0_12 = arith.constant 0 : index
    %15 = vector.load %arg5[%c0_11, %c0_12] : memref<1x16xf32, #tpu.memory_space<vmem>>, vector<1x16xf32>
    %16 = vector.broadcast %15 : vector<1x16xf32> to vector<8x16xf32>
    %17 = arith.addf %14, %16 : vector<8x16xf32>
    %c0_13 = arith.constant 0 : index
    %c0_14 = arith.constant 0 : index
    %18 = vector.load %arg6[%c0_13, %c0_14] : memref<8x16xf32, #tpu.memory_space<vmem>>, vector<8x16xf32>
    tpu.vector_store %arg6[%c0_13, %c0_14], %17 {strides = array<i32>} : memref<8x16xf32, #tpu.memory_space<vmem>>, vector<8x16xf32>,
    return
  }
  func.func @transform_0(%arg0: i32) -> (i32, i32) {
    %c0_i32 = arith.constant 0 : i32
    %c0_i32_0 = arith.constant 0 : i32
    return %arg0, %c0_i32 : i32, i32
  }
  func.func @transform_1(%arg0: i32) -> (i32, i32) {
    %c0_i32 = arith.constant 0 : i32
    %c0_i32_0 = arith.constant 0 : i32
    %c0_i32_1 = arith.constant 0 : i32
    return %c0_i32, %c0_i32_0 : i32, i32
  }
  func.func @transform_2(%arg0: i32) -> (i32, i32) {
    %c0_i32 = arith.constant 0 : i32
    %c0_i32_0 = arith.constant 0 : i32
    %c0_i32_1 = arith.constant 0 : i32
    return %c0_i32, %c0_i32_0 : i32, i32
  }
  func.func @transform_3(%arg0: i32) -> (i32, i32) {
    %c0_i32 = arith.constant 0 : i32
    %c0_i32_0 = arith.constant 0 : i32
    %c0_i32_1 = arith.constant 0 : i32
    return %c0_i32, %c0_i32_0 : i32, i32
  }
  func.func @transform_4(%arg0: i32) -> (i32, i32) {
    %c0_i32 = arith.constant 0 : i32
    %c0_i32_0 = arith.constant 0 : i32
    %c0_i32_1 = arith.constant 0 : i32
    return %c0_i32, %c0_i32_0 : i32, i32
  }
  func.func @transform_5(%arg0: i32) -> (i32, i32) {
    %c0_i32 = arith.constant 0 : i32
    %c0_i32_0 = arith.constant 0 : i32
    return %arg0, %c0_i32 : i32, i32
  }
}

</mosaic_0001>

<bundles_post_ra>
// kernel: tpu_custom_call.1
= control target key start
LH: loop header
LB: loop body
LE: loop exit
PB: predicated region body
PF: predicated region fallthrough
CT: control target
= control target key end

     0   :  { %v355_v3 = vmov 0.0|0.0   ;;  %vm356_vm0 = vmmov 0   ;;  %v357_v6 = vmov 0.0   ;;  %s470_s0 = inlined_call_operand.vmem [shape: f32[8,32], index: 0, kind: input, shape index: {}]   ;;  %s471_s1 = inlined_call_operand.vmem [shape: f32[32,128], index: 1, kind: input, shape index: {}]   ;;  %s472_s2 = inlined_call_operand.vmem [shape: f32[1,128], index: 2, kind: input, shape index: {}]   ;;  %s473_s3 = inlined_call_operand.vmem [shape: f32[128,16], index: 3, kind: input, shape index: {}]   ;;  %s474_s4 = inlined_call_operand.vmem [shape: f32[1,16], index: 4, kind: input, shape index: {}]   ;;  %s475_s5 = inlined_call_operand.hbm [shape: f32[8,16], index: 5, kind: output, shape index: {}]  }
   0x1   :  { %v22_v0 = vld [vmem:[%s471_s1] sm:$0xff]  ;;  %v23_v1 = vld [vmem:[%s471_s1 + $0x8] sm:$0xff]  ;;  %v24_v2 = vld [vmem:[%s471_s1 + $0x10] sm:$0xff]  ;;  %293 = vmatprep.subr.bf16.mxu0 %v355_v3  ;;  %255 = vmatprep.mubr.msk.f32.mxu0 %vm356_vm0, %v357_v6 }
   0x2   :  { %v294_v4 = vpack.c.bf16 %v23_v1, %v22_v0  ;;  %v25_v5 = vld [vmem:[%s471_s1 + $0x18] sm:$0xff]  ;;  %299 = vmatprep.subr.bf16.mxu1 %v355_v3  ;;  %290 = vmatprep.mubr.msk.f32.mxu1 %vm356_vm0, %v357_v6 }
   0x3   :  { %10 = vsyncpa [#allocation3], 0  ;;  %v297_v7 = vpack.c.bf16 %v25_v5, %v24_v2  ;;  %v21_v8 = vld [vmem:[%s470_s0] sm:$0xff]  ;;  %vm33_vm1 = vcmask 261120   ;;  %v114_v10 = vld [vmem:[%s473_s3 + $0x8] sm:$0xff]  ;;  %s358_s0 = smov [#allocation2]  }
   0x4   :  { %295 = vmatpush3.bf16.msra.mxu0 %v294_v4  ;;  %v113_v9 = vld [vmem:[%s473_s3] sm:$0xff]  ;;  %v115_v12 = vld [vmem:[%s473_s3 + $0x10] sm:$0xff]  ;;  %v116_v13 = vld [vmem:[%s473_s3 + $0x18] sm:$0xff]  ;;  %s214_s10 = sshll.u32 %s358_s0, 4  ;;  %vm206_vm2 = vcmask 130048   ;;  %s215_s10 = int_to_ptr.vmem [resolvable:$true] %s214_s10 }
   0x5   :  { %296 = vmatprep.subr.bf16.mxu0 %v355_v3  ;;  %v300_v11 = vpack.c.bf16 %v114_v10, %v113_v9  ;;  %v303_v14 = vpack.c.bf16 %v116_v13, %v115_v12  ;;  %v117_v15 = vld [vmem:[%s473_s3 + $0x20] sm:$0xff]  ;;  %v118_v16 = vld [vmem:[%s473_s3 + $0x28] sm:$0xff]  ;;  %v119_v18 = vld [vmem:[%s473_s3 + $0x30] sm:$0xff]  ;;  %p336_p1 = scmp.lt.s32.totalorder %s215_s10, %s215_s10 }
   0x6   :  { %v306_v17 = vpack.c.bf16 %v118_v16, %v117_v15  ;;  %v120_v19 = vld [vmem:[%s473_s3 + $0x38] sm:$0xff]  ;;  %v121_v21 = vld [vmem:[%s473_s3 + $0x40] sm:$0xff]  ;;  %v122_v22 = vld [vmem:[%s473_s3 + $0x48] sm:$0xff] }
   0x7   :  { %301 = vmatpush3.bf16.msra.mxu1 %v300_v11  ;;  %v309_v20 = vpack.c.bf16 %v120_v19, %v119_v18  ;;  %v312_v23 = vpack.c.bf16 %v122_v22, %v121_v21  ;;  %v123_v24 = vld [vmem:[%s473_s3 + $0x50] sm:$0xff]  ;;  %v124_v25 = vld [vmem:[%s473_s3 + $0x58] sm:$0xff]  ;;  %v125_v27 = vld [vmem:[%s473_s3 + $0x60] sm:$0xff] }
   0x8   :  { %298 = vmatpush3.bf16.msra.mxu0 %v297_v7  ;;  %302 = vmatprep.subr.bf16.mxu1 %v355_v3  ;;  %v315_v26 = vpack.c.bf16 %v124_v25, %v123_v24  ;;  %v126_v28 = vld [vmem:[%s473_s3 + $0x68] sm:$0xff]  ;;  %v127_v30 = vld [vmem:[%s473_s3 + $0x70] sm:$0xff]  ;;  %v128_v31 = vld [vmem:[%s473_s3 + $0x78] sm:$0xff] }
   0x9   :  { %v318_v29 = vpack.c.bf16 %v126_v28, %v125_v27  ;;  %v321_v32 = vpack.c.bf16 %v128_v31, %v127_v30  ;;  %v222_v33 = vld [vmem:[%s472_s2] ss:$0 sm:$0xff]  ;;  %s331_s2 = scalar_lea.vmem %s215_s10, 128 }
   0xa   :  { %v224_v42 = vld [vmem:[%s474_s4] ss:$0 sm:$0xff]  ;;  %p332_p0 = scmp.ne.s32.totalorder %s215_s10, %s331_s2  ;;  %p337_p2 = scmp.lt.s32.totalorder %s331_s2, %s331_s2 }
   0xb   :  { %256 = vmatmul.mubr.msk.f32.vlgmr.msra.gmra.mrb[0].mxu0 %vm33_vm1, %v21_v8  ;;  %304 = vmatpush3.bf16.msra.mxu1 %v303_v14 }
   0xc   :  { %305 = vmatprep.subr.bf16.mxu1 %v355_v3  ;;  %p338_p3 = por %p337_p2, %p336_p1 }
   0xe   :  { %p339_p4 = pnand %p338_p3, %p332_p0 }
   0xf   :  { %307 = vmatpush3.bf16.msra.mxu1 %v306_v17 }
  0x10   :  { %308 = vmatprep.subr.bf16.mxu1 %v355_v3 }
  0x13   :  { %310 = vmatpush3.bf16.msra.mxu1 %v309_v20 }
  0x14   :  { %311 = vmatprep.subr.bf16.mxu1 %v355_v3 }
  0x17   :  { %313 = vmatpush3.bf16.msra.mxu1 %v312_v23 }
  0x18   :  { %314 = vmatprep.subr.bf16.mxu1 %v355_v3 }
  0x1b   :  { %316 = vmatpush3.bf16.msra.mxu1 %v315_v26 }
  0x1c   :  { %317 = vmatprep.subr.bf16.mxu1 %v355_v3 }
  0x1f   :  { %319 = vmatpush3.bf16.msra.mxu1 %v318_v29 }
  0x20   :  { %320 = vmatprep.subr.bf16.mxu1 %v355_v3 }
  0x23   :  { %322 = vmatpush3.bf16.msra.mxu1 %v321_v32 }
  0xde   :  { %v103_v34 = vpop.f32.mrb[0].mxu0 }
  0xdf   :  { %v104_v35 = vadd.f32 %v222_v33, %v103_v34  ;;  %v257_v36 = vpop.f32.mrb[1].mxu0 }
  0xe1   :  { %v107_v37 = vsub.f32 0.0, %v104_v35 }
  0xe3   :  { %v108_v38 = vmul.f32 1.442695, %v107_v37 }
  0xe5   :  { %327 = vpow2.f32 %v108_v38 }
  0xef   :  { %v328_v39 = vpop.eup %327 }
  0xf0   :  { %v110_v40 = vadd.f32 1.0, %v328_v39 }
  0xf2   :  { %329 = vrcp.f32 %v110_v40 }
  0xfc   :  { %v330_v41 = vpop.eup %329 }
  0xfd   :  { %291 = vmatmul.mubr.f32.vlgmr.msra.gmra.mrb[0].mxu1 %v330_v41 }
 0x1d0   :  { %v202_v43 = vpop.f32.mrb[0].mxu1 }
 0x1d1   :  { %v203_v44 = vadd.f32 %v224_v42, %v202_v43  ;;  %v292_v45 = vpop.f32.mrb[1].mxu1 }
 0x1d3   :  { %207 = vst.msk [vmem:[#allocation2] sm:$0xff] %vm206_vm2, %v203_v44 }
 0x1d4   :  { %342 = shalt.err (!%p339_p4)
}
 0x1d5   :  { %s343_s13 = scalar_lea.hbm %s475_s5, 128 }
 0x1d6   :  { %p344_p5 = scmp.ne.s32.totalorder %s475_s5, %s343_s13  ;;  %p347_p6 = scmp.lt.u32.totalorder %s343_s13, %s475_s5 }
 0x1d8   :  { %p349_p7 = pnand %p347_p6, %p344_p5 }
 0x1da   :  { %352 = shalt.err (!%p349_p7)
}
 0x1db   :  { %217 = dma.vmem_to_hbm [thread:$0]  %s215_s10, 128, %s475_s5, [#allocation3]  }
 0x1dc   :  { %353 = dma.done.wait [#allocation3], 128  }
 0x1dd   :  { %354 = vsyncadd [#allocation3], 4294967168 }
 0x1de   :  { %221 = vsyncpa [#allocation3], 1 }

</bundles_post_ra>
